<compile_context>
chip_gen: v7x
topology: tpu7x:2x2x1
jax: 0.10.0
libtpu: 0.0.40
codegen_flags: <defaults>
</compile_context>

<pallas_src>
import functools

import numpy as np
import jax
import jax.numpy as jnp
from jax.experimental import pallas as pl
from jax.experimental.pallas import tpu as pltpu

_TILE_M = 128      # row tile for large batches of pairs
_ROW_PAD = 16      # minimum row padding (bf16 sublane pack granularity)
_BF16 = jnp.bfloat16
_F32 = jnp.float32


def _cparams():
    return pltpu.CompilerParams(
        dimension_semantics=("parallel",),
        vmem_limit_bytes=32 * 1024 * 1024,
    )


def _row_tiling(m):
    """(padded_rows, row_tile): small inputs -> single grid step, else 128-tiles."""
    mp = ((m + _ROW_PAD - 1) // _ROW_PAD) * _ROW_PAD
    if mp <= _TILE_M:
        return mp, mp
    mp = ((m + _TILE_M - 1) // _TILE_M) * _TILE_M
    return mp, _TILE_M


def _tile_for(mp):
    return mp if mp <= _TILE_M else _TILE_M


def _pad_rows_to(x, mp):
    m = x.shape[0]
    if mp == m:
        return x
    return jnp.pad(x, ((0, mp - m),) + ((0, 0),) * (x.ndim - 1))


# ----------------------------- Pallas kernels ------------------------------

def _box_head_kernel(x_ref, w1_ref, b1_ref, w2_ref, b2_ref, o_ref):
    # Flatten + Linear + ReLU + Linear + ReLU fused (box_head); weights bf16.
    h = jnp.dot(x_ref[...].astype(_BF16), w1_ref[...],
                preferred_element_type=_F32) + b1_ref[...]
    h = jnp.maximum(h, 0.0)
    y = jnp.dot(h.astype(_BF16), w2_ref[...],
                preferred_element_type=_F32) + b2_ref[...]
    o_ref[...] = jnp.maximum(y, 0.0).astype(o_ref.dtype)


def _spatial_h2_kernel(x_ref, w1_ref, b1_ref, w2_ref, b2_ref, w3_ref, b3_ref,
                       wc_ref, bc_ref, o_ref):
    # spatial_head (36->128->256->1024, ReLU each) fused with the loop-invariant
    # spatial branches (spat @ W2 + b2) of all four MBF heads; bf16 output.
    h = jnp.maximum(jnp.dot(x_ref[...].astype(_BF16), w1_ref[...],
                            preferred_element_type=_F32) + b1_ref[...], 0.0)
    h = jnp.maximum(jnp.dot(h.astype(_BF16), w2_ref[...],
                            preferred_element_type=_F32) + b2_ref[...], 0.0)
    sp = jnp.maximum(jnp.dot(h.astype(_BF16), w3_ref[...],
                             preferred_element_type=_F32) + b3_ref[...], 0.0)
    h2 = jnp.dot(sp.astype(_BF16), wc_ref[...],
                 preferred_element_type=_F32) + bc_ref[...]
    o_ref[...] = h2.astype(o_ref.dtype)


def _adj_msg_kernel(sx_ref, ny_ref, h2a_ref, h2o_ref,
                    aw1a_ref, aw1b_ref, ab1_ref, aw3_ref, ab3_ref,
                    adjw_ref, adjb_ref,
                    ow1_ref, ob1_ref, ow3_ref, ob3_ref,
                    adj_ref, msg_ref):
    # attention_head MBF + adjacency Linear(R->1) + obj_to_sub MessageMBF fused:
    # both heads share the gathered y-rows; adjacency is a VPU mul + lane reduce.
    sx = sx_ref[...].astype(_BF16)
    ny = ny_ref[...].astype(_BF16)
    # concat([s, n]) @ W1 == s @ W1_top + n @ W1_bot  (no (M,512) concat in HBM)
    h1 = (jnp.dot(sx, aw1a_ref[...], preferred_element_type=_F32)
          + jnp.dot(ny, aw1b_ref[...], preferred_element_type=_F32)
          + ab1_ref[...])
    ha = jnp.maximum(h1 * h2a_ref[...].astype(_F32), 0.0)
    wrep = jnp.maximum(jnp.dot(ha.astype(_BF16), aw3_ref[...],
                               preferred_element_type=_F32) + ab3_ref[...], 0.0)
    adj = jnp.sum(wrep * adjw_ref[...], axis=-1, keepdims=True) + adjb_ref[...]
    adj_ref[...] = adj.astype(adj_ref.dtype)
    # obj_to_sub message (no final ReLU inside the MBF)
    h1o = jnp.dot(ny, ow1_ref[...], preferred_element_type=_F32) + ob1_ref[...]
    ho = jnp.maximum(h1o * h2o_ref[...].astype(_F32), 0.0)
    msg = jnp.dot(ho.astype(_BF16), ow3_ref[...],
                  preferred_element_type=_F32) + ob3_ref[...]
    msg_ref[...] = msg.astype(msg_ref.dtype)


def _mbf_kernel(app_ref, h2_ref, w1_ref, b1_ref, w3_ref, b3_ref, o_ref,
                *, final_relu):
    # MultiBranchFusion with 16 branches stacked and the spatial gate h2
    # precomputed: relu((app @ W1 + b1) * h2) @ W3 + b3.
    h1 = jnp.dot(app_ref[...].astype(_BF16), w1_ref[...],
                 preferred_element_type=_F32) + b1_ref[...]
    h = jnp.maximum(h1 * h2_ref[...].astype(_F32), 0.0)
    y = jnp.dot(h.astype(_BF16), w3_ref[...],
                preferred_element_type=_F32) + b3_ref[...]
    if final_relu:
        y = jnp.maximum(y, 0.0)
    o_ref[...] = y.astype(o_ref.dtype)


def _res_layernorm_kernel(x_ref, m_ref, g_ref, b_ref, o_ref):
    # LayerNorm(x + relu(msg)) * gamma + beta  (residual + message ReLU fused)
    x = x_ref[...] + jnp.maximum(m_ref[...], 0.0)
    mu = jnp.mean(x, axis=-1, keepdims=True)
    var = jnp.mean((x - mu) ** 2, axis=-1, keepdims=True)
    y = (x - mu) * jax.lax.rsqrt(var + 1e-5)
    o_ref[...] = (y * g_ref[...] + b_ref[...]).astype(o_ref.dtype)


def _pair_features_kernel(s_ref, n_ref, g_ref, h2a_ref, h2g_ref,
                          aw1a_ref, aw1b_ref, ab1_ref, aw3_ref, ab3_ref,
                          gw1_ref, gb1_ref, gw3_ref, gb3_ref, o_ref):
    # Final attention_head + attention_head_g fused; (M, 2R) lane-dense output.
    sb = s_ref[...].astype(_BF16)
    nb = n_ref[...].astype(_BF16)
    gb = g_ref[...].astype(_BF16)
    h1 = (jnp.dot(sb, aw1a_ref[...], preferred_element_type=_F32)
          + jnp.dot(nb, aw1b_ref[...], preferred_element_type=_F32)
          + ab1_ref[...])
    ha = jnp.maximum(h1 * h2a_ref[...].astype(_F32), 0.0)
    attn = jnp.maximum(jnp.dot(ha.astype(_BF16), aw3_ref[...],
                               preferred_element_type=_F32) + ab3_ref[...], 0.0)
    h1g = jnp.dot(gb, gw1_ref[...], preferred_element_type=_F32) + gb1_ref[...]
    hg = jnp.maximum(h1g * h2g_ref[...].astype(_F32), 0.0)
    attg = jnp.maximum(jnp.dot(hg.astype(_BF16), gw3_ref[...],
                               preferred_element_type=_F32) + gb3_ref[...], 0.0)
    o_ref[...] = jnp.concatenate([attn, attg], axis=-1).astype(o_ref.dtype)


def _avgpool_kernel(x_ref, o_ref):
    # x: (B, H*W, C) -> mean over sublane axis (C stays lane-dense).
    o_ref[...] = jnp.mean(x_ref[...], axis=1)


# ----------------------------- kernel wrappers ------------------------------

def pallas_box_head(x_flat, q):
    m = x_flat.shape[0]
    mp, tile = _row_tiling(m)
    xp = _pad_rows_to(x_flat, mp)
    k = xp.shape[1]
    d = q['bh_w1'].shape[1]
    out = pl.pallas_call(
        _box_head_kernel,
        out_shape=jax.ShapeDtypeStruct((mp, d), _F32),
        grid=(mp // tile,),
        in_specs=[
            pl.BlockSpec((tile, k), lambda i: (i, 0)),
            pl.BlockSpec((k, d), lambda i: (0, 0)),
            pl.BlockSpec((1, d), lambda i: (0, 0)),
            pl.BlockSpec((d, d), lambda i: (0, 0)),
            pl.BlockSpec((1, d), lambda i: (0, 0)),
        ],
        out_specs=pl.BlockSpec((tile, d), lambda i: (i, 0)),
        compiler_params=_cparams(),
    )(xp, q['bh_w1'], q['bh_b1'], q['bh_w2'], q['bh_b2'])
    return out[:m]


def pallas_spatial_h2(spat36, q):
    m = spat36.shape[0]
    mp, tile = _row_tiling(m)
    xp = _pad_rows_to(spat36, mp)
    k = xp.shape[1]
    d1 = q['sp_w1'].shape[1]
    d2 = q['sp_w2'].shape[1]
    d3 = q['sp_w3'].shape[1]
    dc = q['w2_cat'].shape[1]
    out = pl.pallas_call(
        _spatial_h2_kernel,
        out_shape=jax.ShapeDtypeStruct((mp, dc), _BF16),
        grid=(mp // tile,),
        in_specs=[
            pl.BlockSpec((tile, k), lambda i: (i, 0)),
            pl.BlockSpec((k, d1), lambda i: (0, 0)),
            pl.BlockSpec((1, d1), lambda i: (0, 0)),
            pl.BlockSpec((d1, d2), lambda i: (0, 0)),
            pl.BlockSpec((1, d2), lambda i: (0, 0)),
            pl.BlockSpec((d2, d3), lambda i: (0, 0)),
            pl.BlockSpec((1, d3), lambda i: (0, 0)),
            pl.BlockSpec((d3, dc), lambda i: (0, 0)),
            pl.BlockSpec((1, dc), lambda i: (0, 0)),
        ],
        out_specs=pl.BlockSpec((tile, dc), lambda i: (i, 0)),
        compiler_params=_cparams(),
    )(xp, q['sp_w1'], q['sp_b1'], q['sp_w2'], q['sp_b2'],
      q['sp_w3'], q['sp_b3'], q['w2_cat'], q['b2_cat'])
    return out[:m]


def pallas_adj_msg(s_x, n_y, h2a, h2o, q):
    # All row inputs are pre-padded to the same mp (multiple of 16 / 128).
    mp, e = s_x.shape
    tile = _tile_for(mp)
    cs = q['attn_w1a'].shape[1]
    r = q['attn_w3'].shape[1]
    row = lambda i: (i, 0)
    full = lambda i: (0, 0)
    adj, msg = pl.pallas_call(
        _adj_msg_kernel,
        out_shape=(jax.ShapeDtypeStruct((mp, 1), _F32),
                   jax.ShapeDtypeStruct((mp, r), _F32)),
        grid=(mp // tile,),
        in_specs=[
            pl.BlockSpec((tile, e), row),
            pl.BlockSpec((tile, e), row),
            pl.BlockSpec((tile, cs), row),
            pl.BlockSpec((tile, cs), row),
            pl.BlockSpec((e, cs), full),
            pl.BlockSpec((e, cs), full),
            pl.BlockSpec((1, cs), full),
            pl.BlockSpec((cs, r), full),
            pl.BlockSpec((1, r), full),
            pl.BlockSpec((1, r), full),
            pl.BlockSpec((1, 1), full),
            pl.BlockSpec((e, cs), full),
            pl.BlockSpec((1, cs), full),
            pl.BlockSpec((cs, r), full),
            pl.BlockSpec((1, r), full),
        ],
        out_specs=(pl.BlockSpec((tile, 1), row),
                   pl.BlockSpec((tile, r), row)),
        compiler_params=_cparams(),
    )(s_x, n_y, h2a, h2o,
      q['attn_w1a'], q['attn_w1b'], q['attn_b1'], q['attn_w3'], q['attn_b3'],
      q['adj_w'], q['adj_b'],
      q['o2s_w1'], q['o2s_b1'], q['o2s_w3'], q['o2s_b3'])
    return adj, msg


def pallas_mbf(app, h2, w1, b1, w3, b3, final_relu):
    mp, a = app.shape
    tile = _tile_for(mp)
    cs = w1.shape[1]
    r = w3.shape[1]
    return pl.pallas_call(
        functools.partial(_mbf_kernel, final_relu=final_relu),
        out_shape=jax.ShapeDtypeStruct((mp, r), _F32),
        grid=(mp // tile,),
        in_specs=[
            pl.BlockSpec((tile, a), lambda i: (i, 0)),
            pl.BlockSpec((tile, cs), lambda i: (i, 0)),
            pl.BlockSpec((a, cs), lambda i: (0, 0)),
            pl.BlockSpec((1, cs), lambda i: (0, 0)),
            pl.BlockSpec((cs, r), lambda i: (0, 0)),
            pl.BlockSpec((1, r), lambda i: (0, 0)),
        ],
        out_specs=pl.BlockSpec((tile, r), lambda i: (i, 0)),
        compiler_params=_cparams(),
    )(app, h2, w1, b1, w3, b3)


def pallas_res_layernorm(x, msg, gamma, beta):
    # Padded rows produce beta-valued garbage; they are sliced off immediately.
    m, d = x.shape
    mp, tile = _row_tiling(m)
    xp = _pad_rows_to(x, mp)
    mpad = _pad_rows_to(msg, mp)
    out = pl.pallas_call(
        _res_layernorm_kernel,
        out_shape=jax.ShapeDtypeStruct((mp, d), _F32),
        grid=(mp // tile,),
        in_specs=[
            pl.BlockSpec((tile, d), lambda i: (i, 0)),
            pl.BlockSpec((tile, d), lambda i: (i, 0)),
            pl.BlockSpec((1, d), lambda i: (0, 0)),
            pl.BlockSpec((1, d), lambda i: (0, 0)),
        ],
        out_specs=pl.BlockSpec((tile, d), lambda i: (i, 0)),
        compiler_params=_cparams(),
    )(xp, mpad, gamma, beta)
    return out[:m]


def pallas_pair_features(s_k, n_k, g_k, h2a, h2g, q):
    mp, e = s_k.shape
    tile = _tile_for(mp)
    cs = q['attn_w1a'].shape[1]
    r = q['attn_w3'].shape[1]
    gdim = q['attn_g_w1'].shape[0]
    row = lambda i: (i, 0)
    full = lambda i: (0, 0)
    return pl.pallas_call(
        _pair_features_kernel,
        out_shape=jax.ShapeDtypeStruct((mp, 2 * r), _F32),
        grid=(mp // tile,),
        in_specs=[
            pl.BlockSpec((tile, e), row),
            pl.BlockSpec((tile, e), row),
            pl.BlockSpec((tile, gdim), row),
            pl.BlockSpec((tile, cs), row),
            pl.BlockSpec((tile, cs), row),
            pl.BlockSpec((e, cs), full),
            pl.BlockSpec((e, cs), full),
            pl.BlockSpec((1, cs), full),
            pl.BlockSpec((cs, r), full),
            pl.BlockSpec((1, r), full),
            pl.BlockSpec((gdim, cs), full),
            pl.BlockSpec((1, cs), full),
            pl.BlockSpec((cs, r), full),
            pl.BlockSpec((1, r), full),
        ],
        out_specs=pl.BlockSpec((tile, 2 * r), row),
        compiler_params=_cparams(),
    )(s_k, n_k, g_k, h2a, h2g,
      q['attn_w1a'], q['attn_w1b'], q['attn_b1'], q['attn_w3'], q['attn_b3'],
      q['attn_g_w1'], q['attn_g_b1'], q['attn_g_w3'], q['attn_g_b3'])


def pallas_avgpool(feat):
    # feat: (B, C, H, W) NCHW -> (B, C)   (AdaptiveAvgPool2d(1) + flatten)
    b, c, h, w = feat.shape
    x = feat.reshape(b, c, h * w).transpose(0, 2, 1)  # (B, H*W, C): C on lanes
    return pl.pallas_call(
        _avgpool_kernel,
        out_shape=jax.ShapeDtypeStruct((b, c), _F32),
        grid=(1,),
        in_specs=[pl.BlockSpec((b, h * w, c), lambda i: (0, 0, 0))],
        out_specs=pl.BlockSpec((b, c), lambda i: (0, 0)),
    )(x)


# ----------------------------- parameter init -------------------------------

def _init_linear(key, in_dim, out_dim, scale=0.02):
    k1, k2 = jax.random.split(key)
    w = jax.random.normal(k1, (in_dim, out_dim), _F32) * scale
    b = jax.random.normal(k2, (out_dim,), _F32) * scale
    return w, b


def _init_mbf(key, app_size, spat_size, repr_size, cardinality=16):
    sub = repr_size // cardinality
    assert sub * cardinality == repr_size
    cs = cardinality * sub
    ks = jax.random.split(key, 3)
    w1, b1 = _init_linear(ks[0], app_size, cs)
    w2, b2 = _init_linear(ks[1], spat_size, cs)
    w3, b3 = _init_linear(ks[2], cs, repr_size)  # branch fc_3 biases folded
    return (w1, b1, w2, b2, w3, b3)


def init_graph_head_params(key, out_channels, roi_pool_size, node_enc, repr_size):
    # The spec's norm_s(s + message) requires node_enc == repr_size.
    assert node_enc == repr_size
    keys = jax.random.split(key, 10)
    p = {}
    p['bh_w1'], p['bh_b1'] = _init_linear(keys[0], out_channels * roi_pool_size ** 2, node_enc)
    p['bh_w2'], p['bh_b2'] = _init_linear(keys[1], node_enc, node_enc)
    p['adj_w'], p['adj_b'] = _init_linear(keys[2], repr_size, 1)
    p['s2o'] = _init_mbf(keys[3], node_enc, 1024, repr_size)
    p['o2s'] = _init_mbf(keys[4], node_enc, 1024, repr_size)
    p['ns_g'] = jnp.ones((node_enc,), _F32)
    p['ns_b'] = jnp.zeros((node_enc,), _F32)
    p['no_g'] = jnp.ones((node_enc,), _F32)
    p['no_b'] = jnp.zeros((node_enc,), _F32)
    p['sp_w1'], p['sp_b1'] = _init_linear(keys[5], 36, 128)
    p['sp_w2'], p['sp_b2'] = _init_linear(keys[6], 128, 256)
    p['sp_w3'], p['sp_b3'] = _init_linear(keys[7], 256, 1024)
    p['attn'] = _init_mbf(keys[8], node_enc * 2, 1024, repr_size)
    p['attn_g'] = _init_mbf(keys[9], 256, 1024, repr_size)
    return p


def _prepare_params(p):
    # Weights pre-cast to bf16 once per forward; biases / LN params stay f32.
    enc = p['bh_w1'].shape[1]

    def w(x):
        return x.astype(_BF16)

    def b(x):
        return x.reshape(1, -1).astype(_F32)

    q = dict(
        bh_w1=w(p['bh_w1']), bh_b1=b(p['bh_b1']),
        bh_w2=w(p['bh_w2']), bh_b2=b(p['bh_b2']),
        sp_w1=w(p['sp_w1']), sp_b1=b(p['sp_b1']),
        sp_w2=w(p['sp_w2']), sp_b2=b(p['sp_b2']),
        sp_w3=w(p['sp_w3']), sp_b3=b(p['sp_b3']),
        ns_g=p['ns_g'].reshape(1, -1), ns_b=p['ns_b'].reshape(1, -1),
        no_g=p['no_g'].reshape(1, -1), no_b=p['no_b'].reshape(1, -1),
        adj_w=p['adj_w'].reshape(1, -1).astype(_F32),   # (1, R) for VPU reduce
        adj_b=p['adj_b'].reshape(1, 1).astype(_F32),
    )
    # attention_head: split W1 so concat([s, n]) @ W1 == s @ W1_top + n @ W1_bot
    aw1, ab1, _, _, aw3, ab3 = p['attn']
    q['attn_w1a'] = w(aw1[:enc])
    q['attn_w1b'] = w(aw1[enc:])
    q['attn_b1'] = b(ab1)
    q['attn_w3'] = w(aw3)
    q['attn_b3'] = b(ab3)
    for name in ('o2s', 's2o', 'attn_g'):
        w1, b1, _, _, w3, b3 = p[name]
        q[name + '_w1'] = w(w1)
        q[name + '_b1'] = b(b1)
        q[name + '_w3'] = w(w3)
        q[name + '_b3'] = b(b3)
    # loop-invariant spatial branches of all four MBF heads, stacked:
    # order [attn | o2s | s2o | attn_g] matches the h2_all slicing below.
    q['w2_cat'] = w(jnp.concatenate([p['attn'][2], p['o2s'][2],
                                     p['s2o'][2], p['attn_g'][2]], axis=1))
    q['b2_cat'] = jnp.concatenate([p['attn'][3], p['o2s'][3],
                                   p['s2o'][3], p['attn_g'][3]],
                                  axis=0).reshape(1, -1).astype(_F32)
    return q


# ------------------------- spatial encodings (glue) --------------------------
# TODO(synk): `compute_spatial_encodings` comes from the external `pocket`
# library; reproduced here as deterministic JAX glue (18 base + log features).
def compute_spatial_encodings(b1, b2, shape, eps=1e-10):
    h, w = float(shape[0]), float(shape[1])
    c1_x = (b1[:, 0] + b1[:, 2]) / 2
    c1_y = (b1[:, 1] + b1[:, 3]) / 2
    c2_x = (b2[:, 0] + b2[:, 2]) / 2
    c2_y = (b2[:, 1] + b2[:, 3]) / 2
    b1_w = b1[:, 2] - b1[:, 0]
    b1_h = b1[:, 3] - b1[:, 1]
    b2_w = b2[:, 2] - b2[:, 0]
    b2_h = b2[:, 3] - b2[:, 1]
    d_x = jnp.abs(c2_x - c1_x) / (b1_w + eps)
    d_y = jnp.abs(c2_y - c1_y) / (b1_h + eps)
    lt_x = jnp.maximum(b1[:, 0], b2[:, 0])
    lt_y = jnp.maximum(b1[:, 1], b2[:, 1])
    rb_x = jnp.minimum(b1[:, 2], b2[:, 2])
    rb_y = jnp.minimum(b1[:, 3], b2[:, 3])
    inter = jnp.clip(rb_x - lt_x, 0.0) * jnp.clip(rb_y - lt_y, 0.0)
    area1 = b1_w * b1_h
    area2 = b2_w * b2_h
    iou = inter / (area1 + area2 - inter + eps)
    f = jnp.stack([
        c1_x / w, c1_y / h, c2_x / w, c2_y / h,
        b1_w / w, b1_h / h, b2_w / w, b2_h / h,
        area1 / (h * w), area2 / (h * w),
        area2 / (area1 + eps),
        b1_w / (b1_h + eps), b2_w / (b2_h + eps),
        iou,
        (c2_x > c1_x).astype(_F32) * d_x,
        (c2_x < c1_x).astype(_F32) * d_x,
        (c2_y > c1_y).astype(_F32) * d_y,
        (c2_y < c1_y).astype(_F32) * d_y,
    ], axis=1)
    return jnp.concatenate([f, jnp.log(f + eps)], axis=1)  # (M, 36)


# ------------------------------ GraphHead forward ----------------------------

def graph_head_forward(params, features_p3, image_shapes,
                       subject_box_features, subject_box_coords, subject_box_all_scores,
                       object_box_features, object_box_coords, object_box_all_scores,
                       targets, subject_box_all_logits, object_box_all_logits,
                       num_cls, num_subject_cls, num_object_cls, representation_size,
                       num_iter=2):
    B_img = len(subject_box_coords)
    r = representation_size
    q = _prepare_params(params)

    global_features = pallas_avgpool(features_p3)                  # (B, 256)

    # subject + object box features through one fused box_head call
    ns_total = subject_box_features.shape[0]
    no_total = object_box_features.shape[0]
    box_all = jnp.concatenate(
        [subject_box_features.reshape(ns_total, -1),   # NCHW flatten == Flatten(1)
         object_box_features.reshape(no_total, -1)], axis=0)
    box_feats = pallas_box_head(box_all, q)
    subject_feats = box_feats[:ns_total]
    object_feats = box_feats[ns_total:]

    # ---- pass 1: pair enumeration, spatial encodings, batched index tables --
    metas, spat_list = [], []
    s_rows, node_rows = [], []
    xg_list, yg_list = [], []
    xk_list, yk_list, keepg_list, img_list = [], [], [], []
    sc = oc = 0
    pair_off = s_off = node_off = keep_off = 0
    for b in range(B_img):
        n_s = int(subject_box_coords[b].shape[0])
        n_o = int(object_box_coords[b].shape[0])
        if n_s == 0 or n_o + n_s <= 1:
            metas.append(None)
            continue
        n = n_s + n_o
        x_np, y_np = np.meshgrid(np.arange(n_s), np.arange(n), indexing='ij')
        x_flat = x_np.reshape(-1).astype(np.int32)
        y_flat = y_np.reshape(-1).astype(np.int32)
        keep = np.nonzero(x_flat != y_flat)[0].astype(np.int32)
        coords = jnp.concatenate([subject_box_coords[b], object_box_coords[b]], axis=0)
        spat36 = compute_spatial_encodings(coords[jnp.asarray(x_flat)],
                                           coords[jnp.asarray(y_flat)],
                                           image_shapes[b])
        m_pairs = int(x_flat.shape[0])
        n_keep = int(keep.shape[0])

        s_rows.append(subject_feats[sc:sc + n_s])
        node_rows.append(subject_feats[sc:sc + n_s])
        node_rows.append(object_feats[oc:oc + n_o])

        xg_list.append(x_flat + s_off)
        yg_list.append(y_flat + node_off)
        xk_list.append(x_flat[keep] + s_off)
        yk_list.append(y_flat[keep] + node_off)
        keepg_list.append(keep + pair_off)
        img_list.append(np.full((n_keep,), b, np.int32))

        metas.append(dict(n_s=n_s, n_o=n_o, n=n, x_flat=x_flat, y_flat=y_flat,
                          keep=keep, coords=coords, pair_off=pair_off, m=m_pairs,
                          keep_off=keep_off, n_keep=n_keep))
        spat_list.append(spat36)
        pair_off += m_pairs
        s_off += n_s
        node_off += n
        keep_off += n_keep
        sc += n_s
        oc += n_o

    # ---- pass 2: batched (cross-image) message passing ----------------------
    verb_all = None
    if spat_list:
        s_all = jnp.concatenate(s_rows, axis=0)        # (S_tot, E)
        node_all = jnp.concatenate(node_rows, axis=0)  # (N_tot, E)
        M_tot, Mk_tot = pair_off, keep_off
        mp, _ = _row_tiling(M_tot)
        kp, _ = _row_tiling(Mk_tot)

        # one fused spatial-head call for every pair of every image (bf16 gates)
        spat_all = jnp.concatenate(spat_list, axis=0)
        h2_all = pallas_spatial_h2(spat_all, q)        # (M_tot, 4R) bf16

        # iteration-invariant gate slabs, sliced + padded once
        h2_attn = _pad_rows_to(h2_all[:, 0 * r:1 * r], mp)
        h2_o2s = _pad_rows_to(h2_all[:, 1 * r:2 * r], mp)
        h2_s2o = _pad_rows_to(h2_all[:, 2 * r:3 * r], mp)
        keepg = jnp.asarray(np.concatenate(keepg_list))
        h2_attn_k = _pad_rows_to(h2_all[keepg, 0 * r:1 * r], kp)
        h2_g_k = _pad_rows_to(h2_all[keepg, 3 * r:4 * r], kp)

        # pre-padded gather index vectors (padding rows point at row 0)
        def _pad_idx(idx_np, mp_):
            out = np.zeros((mp_,), np.int32)
            out[:idx_np.shape[0]] = idx_np
            return jnp.asarray(out)

        xg = _pad_idx(np.concatenate(xg_list), mp)
        yg = _pad_idx(np.concatenate(yg_list), mp)
        xk = _pad_idx(np.concatenate(xk_list), kp)
        yk = _pad_idx(np.concatenate(yk_list), kp)
        img_idx = _pad_idx(np.concatenate(img_list), kp)

        for _ in range(num_iter):
            s_x = jnp.take(s_all, xg, axis=0)
            n_y = jnp.take(node_all, yg, axis=0)
            adj_col, msg_os = pallas_adj_msg(s_x, n_y, h2_attn, h2_o2s, q)
            adj_flat = adj_col[:M_tot, 0]
            msg_os = msg_os[:M_tot]

            # per-image softmax-weighted aggregation (tiny, data-dependent)
            msgs_s = []
            for b in range(B_img):
                meta = metas[b]
                if meta is None:
                    continue
                ns_, n_ = meta['n_s'], meta['n']
                po, m_ = meta['pair_off'], meta['m']
                adj_b = adj_flat[po:po + m_].reshape(ns_, n_)
                w_row = jax.nn.softmax(adj_b, axis=1)
                msgs_s.append(jnp.einsum('ij,ijr->ir', w_row,
                                         msg_os[po:po + m_].reshape(ns_, n_, r)))
            msg_s_all = jnp.concatenate(msgs_s, axis=0)
            s_all = pallas_res_layernorm(s_all, msg_s_all, q['ns_g'], q['ns_b'])

            s_x2 = jnp.take(s_all, xg, axis=0)
            msg_so = pallas_mbf(s_x2, h2_s2o, q['s2o_w1'], q['s2o_b1'],
                                q['s2o_w3'], q['s2o_b3'], final_relu=False)[:M_tot]
            msgs_o = []
            for b in range(B_img):
                meta = metas[b]
                if meta is None:
                    continue
                ns_, n_ = meta['n_s'], meta['n']
                po, m_ = meta['pair_off'], meta['m']
                adj_b = adj_flat[po:po + m_].reshape(ns_, n_)
                w_col = jax.nn.softmax(adj_b, axis=0)   # == adj.T.softmax(dim=1)
                msgs_o.append(jnp.einsum('ij,ijr->jr', w_col,
                                         msg_so[po:po + m_].reshape(ns_, n_, r)))
            msg_o_all = jnp.concatenate(msgs_o, axis=0)
            node_all = pallas_res_layernorm(node_all, msg_o_all, q['no_g'], q['no_b'])

        # final attention heads over all kept pairs of all images (one call)
        s_k = jnp.take(s_all, xk, axis=0)
        n_k = jnp.take(node_all, yk, axis=0)
        g_k = jnp.take(global_features, img_idx, axis=0)
        verb_all = pallas_pair_features(s_k, n_k, g_k, h2_attn_k, h2_g_k, q)[:Mk_tot]

    # ---- pass 3: per-image output assembly ----------------------------------
    all_boxes_s, all_boxes_o = [], []
    all_subject_scores, all_object_scores = [], []
    all_labels, all_prior = [], []
    all_box_verb_features = []
    all_subject_logits, all_object_logits = [], []

    for b in range(B_img):
        meta = metas[b]
        if meta is None:
            # TODO(synk): spec uses int64 zeros here; int32 used to avoid x64.
            all_box_verb_features.append(jnp.zeros((0, 2 * r), _F32))
            all_boxes_s.append(jnp.zeros((0, 4), _F32))
            all_boxes_o.append(jnp.zeros((0, 4), _F32))
            all_subject_scores.append(jnp.zeros((0, num_subject_cls), jnp.int32))
            all_object_scores.append(jnp.zeros((0, num_object_cls), jnp.int32))
            all_prior.append(jnp.zeros((2, 0, num_cls), _F32))
            all_labels.append(jnp.zeros((0, num_cls), _F32))
            all_subject_logits.append(jnp.zeros((0, num_subject_cls), jnp.int32))
            all_object_logits.append(jnp.zeros((0, num_object_cls), jnp.int32))
            continue

        # TODO(synk): associate_with_ground_truth skipped (inference, targets=None).
        ko, nk = meta['keep_off'], meta['n_keep']
        keep, x_flat, y_flat = meta['keep'], meta['x_flat'], meta['y_flat']
        coords = meta['coords']
        all_box_verb_features.append(verb_all[ko:ko + nk])
        all_boxes_s.append(coords[jnp.asarray(x_flat[keep])])
        all_boxes_o.append(coords[jnp.asarray(y_flat[keep])])
        all_subject_scores.append(subject_box_all_scores[b])
        all_object_scores.append(object_box_all_scores[b])
        all_subject_logits.append(subject_box_all_logits[b])
        all_object_logits.append(object_box_all_logits[b])
        all_prior.append(jnp.ones((2, nk, num_cls), _F32))

    return (all_box_verb_features, all_boxes_s, all_boxes_o, all_object_scores,
            all_subject_scores, all_labels, all_prior, all_subject_logits,
            all_object_logits)


# ----------------------------------- main ------------------------------------

if __name__ == "__main__":
    key = jax.random.PRNGKey(0)

    # small-but-consistent configuration
    B = 2
    out_channels = 256           # FPN channels (features['3'] and pooled boxes)
    roi_pool_size = 2
    node_encoding_size = 256     # must equal representation_size (norm over s+msg)
    representation_size = 256    # divisible by cardinality=16
    num_cls, num_subject_cls, num_object_cls = 8, 5, 7
    n_s, n_o = 3, 5              # boxes per image

    kp, kf, kb, ks = jax.random.split(key, 4)
    params = init_graph_head_params(kp, out_channels, roi_pool_size,
                                    node_encoding_size, representation_size)

    # inputs
    features_p3 = jax.random.normal(kf, (B, 256, 4, 4), _F32)  # NCHW
    kf1, kf2 = jax.random.split(kf)
    subject_box_features = jax.random.normal(
        kf1, (B * n_s, out_channels, roi_pool_size, roi_pool_size), _F32)
    object_box_features = jax.random.normal(
        kf2, (B * n_o, out_channels, roi_pool_size, roi_pool_size), _F32)

    def make_boxes(k, m):
        k1, k2 = jax.random.split(k)
        x1y1 = jax.random.uniform(k1, (m, 2), minval=0.0, maxval=32.0)
        wh = jax.random.uniform(k2, (m, 2), minval=4.0, maxval=24.0)
        return jnp.concatenate([x1y1, x1y1 + wh], axis=1)  # xyxy

    bkeys = jax.random.split(kb, 2 * B)
    subject_box_coords = [make_boxes(bkeys[i], n_s) for i in range(B)]
    object_box_coords = [make_boxes(bkeys[B + i], n_o) for i in range(B)]

    skeys = jax.random.split(ks, 4 * B)
    subject_box_all_scores = [jax.random.uniform(skeys[i], (n_s, num_subject_cls)) for i in range(B)]
    object_box_all_scores = [jax.random.uniform(skeys[B + i], (n_o, num_object_cls)) for i in range(B)]
    subject_box_all_logits = [jax.random.normal(skeys[2 * B + i], (n_s, num_subject_cls)) for i in range(B)]
    object_box_all_logits = [jax.random.normal(skeys[3 * B + i], (n_o, num_object_cls)) for i in range(B)]

    image_shapes = [(64, 64)] * B

    out = graph_head_forward(
        params, features_p3, image_shapes,
        subject_box_features, subject_box_coords, subject_box_all_scores,
        object_box_features, object_box_coords, object_box_all_scores,
        None,  # targets (inference)
        subject_box_all_logits, object_box_all_logits,
        num_cls=num_cls, num_subject_cls=num_subject_cls,
        num_object_cls=num_object_cls, representation_size=representation_size,
        num_iter=2)

    jax.block_until_ready(out)
    verb_feats = out[0]
    assert verb_feats[0].shape == (n_s * (n_s + n_o) - n_s, 2 * representation_size)
    assert verb_feats[1].shape == (n_s * (n_s + n_o) - n_s, 2 * representation_size)
    print("KERNEL_OK")
</pallas_src>

<mosaic_0001>
module attributes {stable_mosaic.version = 11 : i64} {
  func.func @_avgpool_kernel(%arg0: i32, %arg1: memref<2x16x256xf32, #tpu.memory_space<vmem>>, %arg2: memref<2x256xf32, #tpu.memory_space<vmem>>) attributes {dimension_semantics = [#tpu.dimension_semantics<arbitrary>], iteration_bounds = array<i64: 1>, scalar_prefetch = 0 : i64, scratch_operands = 0 : i64, tpu.core_type = #tpu.core_type<tc>, window_params = [{pipeline_mode = #tpu.pipeline_mode<synchronous>, transform_indices = @transform_0, window_bounds = array<i64: 2, 16, 256>}, {pipeline_mode = #tpu.pipeline_mode<synchronous>, transform_indices = @transform_1, window_bounds = array<i64: 2, 256>}]} {
    %c0 = arith.constant 0 : index
    %c0_0 = arith.constant 0 : index
    %c0_1 = arith.constant 0 : index
    %0 = vector.load %arg1[%c0, %c0_0, %c0_1] : memref<2x16x256xf32, #tpu.memory_space<vmem>>, vector<2x16x256xf32>
    %cst = arith.constant dense<0.000000e+00> : vector<2x256xf32>
    %1 = vector.multi_reduction <add>, %0, %cst [1] : vector<2x16x256xf32> to vector<2x256xf32>
    %cst_2 = arith.constant 1.600000e+01 : f32
    %2 = vector.broadcast %cst_2 : f32 to vector<2x256xf32>
    %3 = arith.divf %1, %2 : vector<2x256xf32>
    %c0_3 = arith.constant 0 : index
    %c0_4 = arith.constant 0 : index
    %4 = vector.load %arg2[%c0_3, %c0_4] : memref<2x256xf32, #tpu.memory_space<vmem>>, vector<2x256xf32>
    tpu.vector_store %arg2[%c0_3, %c0_4], %3 {strides = array<i32>} : memref<2x256xf32, #tpu.memory_space<vmem>>, vector<2x256xf32>,
    return
  }
  func.func @transform_0(%arg0: i32) -> (i32, i32, i32) {
    %c0_i32 = arith.constant 0 : i32
    %c0_i32_0 = arith.constant 0 : i32
    %c0_i32_1 = arith.constant 0 : i32
    %c0_i32_2 = arith.constant 0 : i32
    return %c0_i32, %c0_i32_0, %c0_i32_1 : i32, i32, i32
  }
  func.func @transform_1(%arg0: i32) -> (i32, i32) {
    %c0_i32 = arith.constant 0 : i32
    %c0_i32_0 = arith.constant 0 : i32
    %c0_i32_1 = arith.constant 0 : i32
    return %c0_i32, %c0_i32_0 : i32, i32
  }
}

</mosaic_0001>

<bundles_post_ra>
// kernel: tpu_custom_call.1
= control target key start
LH: loop header
LB: loop body
LE: loop exit
PB: predicated region body
PF: predicated region fallthrough
CT: control target
= control target key end

     0   :  { %6 = vsyncpa [#allocation3], 0  ;;  %s206_s0 = inlined_call_operand.hbm [shape: f32[2,16,256], index: 0, kind: input, shape index: {}]   ;;  %s207_s1 = inlined_call_operand.hbm [shape: f32[2,256], index: 1, kind: output, shape index: {}]  }
   0x1   :  { %7 = vsyncpa [#allocation4], 0  ;;  %s167_s6 = smov [#allocation2]   ;;  %s119_s10 = scalar_lea.hbm %s206_s0, 1024 }
   0x2   :  { %s13_s7 = sshll.u32 %s167_s6, 4  ;;  %p120_p0 = scmp.ne.s32.totalorder %s206_s0, %s119_s10  ;;  %s14_s7 = int_to_ptr.vmem [resolvable:$true] %s13_s7 }
   0x3   :  { %p123_p1 = scmp.lt.u32.totalorder %s119_s10, %s206_s0 }
   0x5   :  { %p125_p2 = pnand %p123_p1, %p120_p0 }
   0x7   :  { %128 = shalt.err (!%p125_p2)
}
   0x8   :  { %s129_s15 = scalar_lea.vmem %s14_s7, 1024  ;;  %p134_p4 = scmp.lt.s32.totalorder %s14_s7, %s14_s7 }
   0x9   :  { %p130_p3 = scmp.ne.s32.totalorder %s14_s7, %s129_s15  ;;  %p135_p5 = scmp.lt.s32.totalorder %s129_s15, %s129_s15 }
   0xb   :  { %p136_p6 = por %p135_p5, %p134_p4 }
   0xd   :  { %p137_p7 = pnand %p136_p6, %p130_p3 }
   0xf   :  { %140 = shalt.err (!%p137_p7)
}
  0x10   :  { %s168_s16 = smov 256   ;;  %s169_s17 = smov 16  }
  0x11   :  { %19 = dma.hbm_to_vmem [thread:$0]  %s206_s0, 1024, %s14_s7, [#allocation3], %s168_s16, %s168_s16, %s169_s17  }
  0x12   :  { %163 = dma.done.wait [#allocation3], 1024  }
  0x13   :  { %164 = vsyncadd [#allocation3], 4294966272  ;;  %v23_v0 = vld [vmem:[#allocation2] sm:$0xff]  ;;  %v24_v1 = vld [vmem:[#allocation2 + $0x8] sm:$0xff]  ;;  %v72_v22 = vlaneseq  ;;  %v170_v26 = vmov 1983009808  }
  0x14   :  { %v25_v2 = vld [vmem:[#allocation2 + $0x10] sm:$0xff]  ;;  %v26_v3 = vld [vmem:[#allocation2 + $0x18] sm:$0xff]  ;;  %v27_v4 = vld [vmem:[#allocation2 + $0x20] sm:$0xff]  ;;  %v70_v27 = vunpack.c.l.s4 %v170_v26  ;;  %vm89_vm0 = vcmask 1041409   ;;  %vm91_vm1 = vcmask 1043459   ;;  %vm93_vm2 = vcmask 1045509  }
  0x15   :  { %v28_v5 = vld [vmem:[#allocation2 + $0x28] sm:$0xff]  ;;  %v31_v6 = vadd.f32 %v25_v2, %v23_v0  ;;  %v29_v7 = vld [vmem:[#allocation2 + $0x30] sm:$0xff]  ;;  %v30_v8 = vld [vmem:[#allocation2 + $0x38] sm:$0xff]  ;;  %v38_v9 = vadd.f32 %v26_v3, %v24_v1  ;;  %v73_v33 = vshrl.u32 %v72_v22, 7  ;;  %s171_s0 = smov [#allocation5]   ;;  %vm95_vm3 = vcmask 1047559  }
  0x16   :  { %v45_v11 = vadd.f32 %v29_v7, %v27_v4  ;;  %v52_v12 = vadd.f32 %v30_v8, %v28_v5  ;;  %v71_v37 = vunpack.c.0.s8 %v70_v27  ;;  %s105_s20 = sshll.u32 %s171_s0, 4  ;;  %s106_s20 = int_to_ptr.vmem [resolvable:$true] %s105_s20 }
  0x17   :  { %v32_v10 = vrot.slane %v31_v6, 4  ;;  %v39_v13 = vrot.slane %v38_v9, 4  ;;  %s141_s21 = scalar_lea.vmem %s106_s20, 64  ;;  %p146_p9 = scmp.lt.s32.totalorder %s106_s20, %s106_s20 }
  0x18   :  { %v46_v15 = vrot.slane %v45_v11, 4  ;;  %v53_v16 = vrot.slane %v52_v12, 4  ;;  %v74_v45 = vsub.s32 %v71_v37, %v73_v33  ;;  %p142_p8 = scmp.ne.s32.totalorder %s106_s20, %s141_s21  ;;  %p147_p10 = scmp.lt.s32.totalorder %s141_s21, %s141_s21 }
  0x19   :  { %v33_v14 = vadd.f32 %v32_v10, %v31_v6  ;;  %v40_v17 = vadd.f32 %v39_v13, %v38_v9 }
  0x1a   :  { %v47_v19 = vadd.f32 %v46_v15, %v45_v11  ;;  %v54_v20 = vadd.f32 %v53_v16, %v52_v12  ;;  %p148_p11 = por %p147_p10, %p146_p9 }
  0x1b   :  { %v34_v18 = vrot.slane %v33_v14, 2  ;;  %v41_v21 = vrot.slane %v40_v17, 2 }
  0x1c   :  { %v48_v24 = vrot.slane %v47_v19, 2  ;;  %v55_v25 = vrot.slane %v54_v20, 2  ;;  %p149_p12 = pnand %p148_p11, %p142_p8 }
  0x1d   :  { %v35_v23 = vadd.f32 %v34_v18, %v33_v14  ;;  %v42_v28 = vadd.f32 %v41_v21, %v40_v17 }
  0x1e   :  { %v49_v30 = vadd.f32 %v48_v24, %v47_v19  ;;  %v56_v31 = vadd.f32 %v55_v25, %v54_v20 }
  0x1f   :  { %v36_v29 = vrot.slane %v35_v23, 1  ;;  %v43_v32 = vrot.slane %v42_v28, 1 }
  0x20   :  { %v50_v35 = vrot.slane %v49_v30, 1  ;;  %v57_v36 = vrot.slane %v56_v31, 1 }
  0x21   :  { %v37_v34 = vadd.f32 %v36_v29, %v35_v23  ;;  %v44_v38 = vadd.f32 %v43_v32, %v42_v28 }
  0x22   :  { %v51_v39 = vadd.f32 %v50_v35, %v49_v30  ;;  %v58_v40 = vadd.f32 %v57_v36, %v56_v31 }
  0x23   :  { %v60_v41 = vmul.f32 0.0625, %v37_v34  ;;  %v61_v42 = vmul.f32 0.0625, %v44_v38 }
  0x24   :  { %v62_v43 = vmul.f32 0.0625, %v51_v39  ;;  %v63_v44 = vmul.f32 0.0625, %v58_v40 }
  0x25   :  { %v68_v46 = vcombine.low %v60_v41, %v61_v42 }
  0x26   :  { %v76_v47 = vcombine.low %v62_v43, %v63_v44 }
  0x27   :  { %v75_v48 = vrot.slane %v68_v46, %v74_v45 }
  0x28   :  { %v83_v49 = vrot.slane %v76_v47, %v74_v45 }
  0x2a   :  { %v88_v50 = vrot.slane %v83_v49, 7 }
  0x2c   :  { %v90_v51 = vsel %vm89_vm0, %v88_v50, %v75_v48 }
  0x2d   :  { %v92_v52 = vsel %vm91_vm1, %v88_v50, %v90_v51 }
  0x2e   :  { %v94_v53 = vsel %vm93_vm2, %v88_v50, %v92_v52 }
  0x2f   :  { %v96_v54 = vsel %vm95_vm3, %v88_v50, %v94_v53 }
  0x30   :  { %98 = vst [vmem:[#allocation5] sm:$0xf] %v96_v54 }
  0x31   :  { %152 = shalt.err (!%p149_p12)
}
  0x32   :  { %s153_s24 = scalar_lea.hbm %s207_s1, 64 }
  0x33   :  { %p154_p13 = scmp.ne.s32.totalorder %s207_s1, %s153_s24  ;;  %p157_p0 = scmp.lt.u32.totalorder %s153_s24, %s207_s1 }
  0x35   :  { %p159_p1 = pnand %p157_p0, %p154_p13 }
  0x37   :  { %162 = shalt.err (!%p159_p1)
}
  0x38   :  { %108 = dma.vmem_to_hbm [thread:$0]  %s106_s20, 64, %s207_s1, [#allocation4]  }
  0x39   :  { %165 = dma.done.wait [#allocation4], 64  }
  0x3a   :  { %166 = vsyncadd [#allocation4], 4294967232 }
  0x3b   :  { %112 = vsyncpa [#allocation3], 1 }
  0x3c   :  { %113 = vsyncpa [#allocation4], 1 }

</bundles_post_ra>
